<compile_context>
chip_gen: v7x
topology: tpu7x:2x2x1
jax: 0.10.0
libtpu: 0.0.40
codegen_flags: <defaults>
</compile_context>

<pallas_src>
import jax
import jax.numpy as jnp
from jax.experimental import pallas as pl
from jax.experimental.pallas import tpu as pltpu

# Explicit scoped-VMEM limit: safe on v5e/v6e (128 MiB physical) and v7x (64 MiB physical),
# and well above v5e's 16 MiB default so big batch tiles compile there too.
_VMEM_LIMIT_BYTES = 48 * 1024 * 1024
# What the tile-size calculation is allowed to consume (headroom under the limit for
# compiler-internal scratch and double-buffer bookkeeping).
_VMEM_TILE_BUDGET = 32 * 1024 * 1024
_MAX_TILE_M = 4096          # diminishing returns past a few thousand rows (step overhead ~0.35 us)
_SPLIT_THRESHOLD = 1024     # batches at/above this are split into >= 2 tiles for v7x megacore


def _mlp_kernel(x_ref, w1_ref, b1_ref, w2_ref, b2_ref, o_ref):
    # Cast activations to the weight dtype right before each MXU op (bf16 weights by default);
    # bias add / ReLU / accumulation stay f32 on the VPU. The HBM read of x is f32 — no
    # separate wrapper-side conversion pass.
    x = x_ref[...].astype(w1_ref.dtype)
    h = jnp.dot(x, w1_ref[...], preferred_element_type=jnp.float32)
    h = jnp.maximum(h + b1_ref[...], 0.0)
    out = jnp.dot(h.astype(w2_ref.dtype), w2_ref[...], preferred_element_type=jnp.float32)
    o_ref[...] = (out + b2_ref[...]).astype(o_ref.dtype)


def _choose_batch_tiling(batch, in_feat, hidden, n_out, x_itemsize, w_itemsize):
    """Pick (tile_m, pad_b, n_tiles) from the VMEM budget.

    Budget model (conservative: everything counted at 2 pipeline buffers):
      fixed   = weights + biases  (grid-invariant, VMEM-resident)
      per_row = x tile row + output tile row
    """
    fixed = 2 * (in_feat * hidden * w_itemsize + hidden * n_out * w_itemsize
                 + (hidden + n_out) * 4)
    per_row = 2 * (in_feat * x_itemsize + n_out * 4)
    cap = (_VMEM_TILE_BUDGET - fixed) // per_row
    # NOTE: for very large in_feat (cap collapsing toward 8 rows), the right fix is a K
    # grid axis with an f32 accumulator rather than shrinking tile_m further.
    cap = max(8, min(_MAX_TILE_M, (cap // 8) * 8))

    if batch <= cap:
        if batch >= _SPLIT_THRESHOLD:
            # Split into (at least) two tiles so the "parallel" batch axis can span both
            # v7x TensorCores; harmless on single-TC v5e/v6e.
            tile_m = pl.cdiv(pl.cdiv(batch, 2), 8) * 8
            pad_b = pl.cdiv(batch, tile_m) * tile_m
            return tile_m, pad_b, pad_b // tile_m
        # Single tile covering the whole batch; block_shape == full array dim is legal
        # even when batch is not a multiple of 8, so no padding pass is needed.
        return batch, batch, 1

    tile_m = cap
    pad_b = pl.cdiv(batch, tile_m) * tile_m
    return tile_m, pad_b, pad_b // tile_m


def reward_prediction_forward(image, w1, b1, w2, b2):
    """image: (B, 3, C, H, W) float32. Weights: (in,out) layout (transpose of torch),
    typically bf16 (see init_params). Returns (B, 2) float32."""
    # TODO(synk): external `encoders` modules are injected from outside this class and not
    # defined by it; they are modeled as the identity (empty list) here.
    batch = image.shape[0]
    x = image.reshape(batch, -1)            # == image.view(batch_size, -1), f32
    in_feat = x.shape[1]
    hidden = w1.shape[1]
    n_out = w2.shape[1]

    tile_m, pad_b, n_tiles = _choose_batch_tiling(
        batch, in_feat, hidden, n_out,
        x_itemsize=x.dtype.itemsize, w_itemsize=w1.dtype.itemsize)

    if pad_b != batch:
        # Only the multi-tile path pads (one extra pass over <= tile_m-1 rows). Padded rows
        # compute ReLU(b1)@W2+b2 and are sliced off below — keep that slice.
        x = jnp.pad(x, ((0, pad_b - batch), (0, 0)))

    flops = 2 * pad_b * (in_feat * hidden + hidden * n_out)
    bytes_accessed = (
        pad_b * in_feat * x.dtype.itemsize      # x at its real kernel-input width (f32)
        + in_feat * hidden * w1.dtype.itemsize  # W1
        + hidden * n_out * w2.dtype.itemsize    # W2
        + (hidden + n_out) * 4                  # biases (f32)
        + pad_b * n_out * 4                     # output (f32)
    )

    out_padded = pl.pallas_call(
        _mlp_kernel,
        out_shape=jax.ShapeDtypeStruct((pad_b, n_out), jnp.float32),
        grid=(n_tiles,),
        in_specs=[
            pl.BlockSpec((tile_m, in_feat), lambda i: (i, 0)),   # x: tiled over batch
            pl.BlockSpec((in_feat, hidden), lambda i: (0, 0)),   # weights: VMEM-resident across grid
            pl.BlockSpec((1, hidden), lambda i: (0, 0)),
            pl.BlockSpec((hidden, n_out), lambda i: (0, 0)),
            pl.BlockSpec((1, n_out), lambda i: (0, 0)),
        ],
        out_specs=pl.BlockSpec((tile_m, n_out), lambda i: (i, 0)),
        compiler_params=pltpu.CompilerParams(
            dimension_semantics=("parallel",),          # v7x: shard batch tiles over 2 TCs
            vmem_limit_bytes=_VMEM_LIMIT_BYTES,         # v5e default (16 MiB) would cap tile_m
        ),
        cost_estimate=pl.CostEstimate(
            flops=flops, transcendentals=0, bytes_accessed=bytes_accessed),
    )(x, w1, b1, w2, b2)

    return out_padded[:batch]


def _xavier_normal(key, fan_in, fan_out):
    # nn.init.xavier_normal_: std = gain * sqrt(2 / (fan_in + fan_out)), gain = 1.
    std = (2.0 / (fan_in + fan_out)) ** 0.5
    # Stored as (in_features, out_features): transpose of torch's layout so the kernel needs no transpose.
    return std * jax.random.normal(key, (fan_in, fan_out), dtype=jnp.float32)


def init_params(key, num_input_to_fc, matmul_dtype=jnp.bfloat16):
    """Parameters for the fc1 MLP.

    `matmul_dtype` is an explicit precision choice: weights are stored once in this dtype
    (default bf16 -> MXU-native operands with f32 accumulation in the kernel). Pass
    jnp.float32 for bit-faithful f32 matmuls matching the PyTorch reference exactly.
    Biases are always f32.
    """
    k1, k2 = jax.random.split(key)
    in_feat = 3 * num_input_to_fc
    w1 = _xavier_normal(k1, in_feat, 128).astype(matmul_dtype)
    b1 = jnp.zeros((1, 128), dtype=jnp.float32)    # nn.init.constant_(bias, 0)
    w2 = _xavier_normal(k2, 128, 2).astype(matmul_dtype)
    b2 = jnp.zeros((1, 2), dtype=jnp.float32)
    return w1, b1, w2, b2


if __name__ == "__main__":
    key = jax.random.PRNGKey(0)
    k_img, k_par = jax.random.split(key)

    # Small shapes: batch=2, concat=3 frames, C=4, H=W=8 -> num_input_to_fc = 4*8*8 = 256, in_feat = 768.
    B, CONCAT, C, H, W = 2, 3, 4, 8, 8
    num_input_to_fc = C * H * W

    image = jax.random.normal(k_img, (B, CONCAT, C, H, W), dtype=jnp.float32)
    w1, b1, w2, b2 = init_params(k_par, num_input_to_fc)

    out = reward_prediction_forward(image, w1, b1, w2, b2)
    out = jax.block_until_ready(out)

    # Reference check (plain JAX, f32). Kernel uses bf16 MXU operands with f32 accumulation,
    # so use a tolerance that covers bf16 rounding.
    x_ref = image.reshape(B, -1)
    ref = (jnp.maximum(x_ref @ w1.astype(jnp.float32) + b1, 0.0)
           @ w2.astype(jnp.float32) + b2)
    assert out.shape == (B, 2)
    assert jnp.allclose(out, ref, atol=5e-2, rtol=5e-2)

    print("KERNEL_OK")
</pallas_src>

<mosaic_0001>
module attributes {stable_mosaic.version = 11 : i64} {
  func.func @_mlp_kernel(%arg0: i32, %arg1: memref<2x768xf32, #tpu.memory_space<vmem>>, %arg2: memref<768x128xbf16, #tpu.memory_space<vmem>>, %arg3: memref<1x128xf32, #tpu.memory_space<vmem>>, %arg4: memref<128x2xbf16, #tpu.memory_space<vmem>>, %arg5: memref<1x2xf32, #tpu.memory_space<vmem>>, %arg6: memref<2x2xf32, #tpu.memory_space<vmem>>) attributes {dimension_semantics = [#tpu.dimension_semantics<parallel>], iteration_bounds = array<i64: 1>, scalar_prefetch = 0 : i64, scratch_operands = 0 : i64, tpu.core_type = #tpu.core_type<tc>, window_params = [{transform_indices = @transform_0, window_bounds = array<i64: 2, 768>}, {pipeline_mode = #tpu.pipeline_mode<synchronous>, transform_indices = @transform_1, window_bounds = array<i64: 768, 128>}, {pipeline_mode = #tpu.pipeline_mode<synchronous>, transform_indices = @transform_2, window_bounds = array<i64: 1, 128>}, {pipeline_mode = #tpu.pipeline_mode<synchronous>, transform_indices = @transform_3, window_bounds = array<i64: 128, 2>}, {pipeline_mode = #tpu.pipeline_mode<synchronous>, transform_indices = @transform_4, window_bounds = array<i64: 1, 2>}, {transform_indices = @transform_5, window_bounds = array<i64: 2, 2>}]} {
    %c0 = arith.constant 0 : index
    %c0_0 = arith.constant 0 : index
    %0 = vector.load %arg1[%c0, %c0_0] : memref<2x768xf32, #tpu.memory_space<vmem>>, vector<2x768xf32>
    %1 = arith.truncf %0 : vector<2x768xf32> to vector<2x768xbf16>
    %c0_1 = arith.constant 0 : index
    %c0_2 = arith.constant 0 : index
    %2 = vector.load %arg2[%c0_1, %c0_2] : memref<768x128xbf16, #tpu.memory_space<vmem>>, vector<768x128xbf16>
    %cst = arith.constant dense<0.000000e+00> : vector<2x128xf32>
    %3 = tpu.matmul %1, %2, %cst {dimension_numbers = #tpu.dot_dimension_numbers<[1], [0], [0], [1], [0, 0, 1, 1], [], []>} : vector<2x768xbf16>, vector<768x128xbf16>, vector<2x128xf32> -> vector<2x128xf32>
    %c0_3 = arith.constant 0 : index
    %c0_4 = arith.constant 0 : index
    %4 = vector.load %arg3[%c0_3, %c0_4] : memref<1x128xf32, #tpu.memory_space<vmem>>, vector<1x128xf32>
    %5 = vector.broadcast %4 : vector<1x128xf32> to vector<2x128xf32>
    %6 = arith.addf %3, %5 : vector<2x128xf32>
    %cst_5 = arith.constant 0.000000e+00 : f32
    %7 = vector.broadcast %cst_5 : f32 to vector<2x128xf32>
    %8 = arith.maximumf %6, %7 : vector<2x128xf32>
    %9 = arith.truncf %8 : vector<2x128xf32> to vector<2x128xbf16>
    %c0_6 = arith.constant 0 : index
    %c0_7 = arith.constant 0 : index
    %10 = vector.load %arg4[%c0_6, %c0_7] : memref<128x2xbf16, #tpu.memory_space<vmem>>, vector<128x2xbf16>
    %cst_8 = arith.constant dense<0.000000e+00> : vector<2x2xf32>
    %11 = tpu.matmul %9, %10, %cst_8 {dimension_numbers = #tpu.dot_dimension_numbers<[1], [0], [0], [1], [0, 0, 1, 1], [], []>} : vector<2x128xbf16>, vector<128x2xbf16>, vector<2x2xf32> -> vector<2x2xf32>
    %c0_9 = arith.constant 0 : index
    %c0_10 = arith.constant 0 : index
    %12 = vector.load %arg5[%c0_9, %c0_10] : memref<1x2xf32, #tpu.memory_space<vmem>>, vector<1x2xf32>
    %13 = vector.broadcast %12 : vector<1x2xf32> to vector<2x2xf32>
    %14 = arith.addf %11, %13 : vector<2x2xf32>
    %c0_11 = arith.constant 0 : index
    %c0_12 = arith.constant 0 : index
    %15 = vector.load %arg6[%c0_11, %c0_12] : memref<2x2xf32, #tpu.memory_space<vmem>>, vector<2x2xf32>
    tpu.vector_store %arg6[%c0_11, %c0_12], %14 {strides = array<i32>} : memref<2x2xf32, #tpu.memory_space<vmem>>, vector<2x2xf32>,
    return
  }
  func.func @transform_0(%arg0: i32) -> (i32, i32) {
    %c0_i32 = arith.constant 0 : i32
    %c0_i32_0 = arith.constant 0 : i32
    return %arg0, %c0_i32 : i32, i32
  }
  func.func @transform_1(%arg0: i32) -> (i32, i32) {
    %c0_i32 = arith.constant 0 : i32
    %c0_i32_0 = arith.constant 0 : i32
    %c0_i32_1 = arith.constant 0 : i32
    return %c0_i32, %c0_i32_0 : i32, i32
  }
  func.func @transform_2(%arg0: i32) -> (i32, i32) {
    %c0_i32 = arith.constant 0 : i32
    %c0_i32_0 = arith.constant 0 : i32
    %c0_i32_1 = arith.constant 0 : i32
    return %c0_i32, %c0_i32_0 : i32, i32
  }
  func.func @transform_3(%arg0: i32) -> (i32, i32) {
    %c0_i32 = arith.constant 0 : i32
    %c0_i32_0 = arith.constant 0 : i32
    %c0_i32_1 = arith.constant 0 : i32
    return %c0_i32, %c0_i32_0 : i32, i32
  }
  func.func @transform_4(%arg0: i32) -> (i32, i32) {
    %c0_i32 = arith.constant 0 : i32
    %c0_i32_0 = arith.constant 0 : i32
    %c0_i32_1 = arith.constant 0 : i32
    return %c0_i32, %c0_i32_0 : i32, i32
  }
  func.func @transform_5(%arg0: i32) -> (i32, i32) {
    %c0_i32 = arith.constant 0 : i32
    %c0_i32_0 = arith.constant 0 : i32
    return %arg0, %c0_i32 : i32, i32
  }
}

</mosaic_0001>

<bundles_post_ra>
// kernel: tpu_custom_call.1
= control target key start
LH: loop header
LB: loop body
LE: loop exit
PB: predicated region body
PF: predicated region fallthrough
CT: control target
= control target key end

     0   :  { %10 = vsyncpa [#allocation3], 0  ;;  %s1081_s0 = inlined_call_operand.vmem [shape: f32[2,768], index: 0, kind: input, shape index: {}]   ;;  %s1082_s1 = inlined_call_operand.hbm [shape: bf16[768,128], index: 1, kind: input, shape index: {}]   ;;  %s1083_s2 = inlined_call_operand.vmem [shape: f32[1,128], index: 2, kind: input, shape index: {}]   ;;  %s1084_s3 = inlined_call_operand.vmem [shape: bf16[128,2], index: 3, kind: input, shape index: {}]   ;;  %s1085_s4 = inlined_call_operand.vmem [shape: f32[1,2], index: 4, kind: input, shape index: {}]   ;;  %s1086_s5 = inlined_call_operand.hbm [shape: f32[2,2], index: 5, kind: output, shape index: {}]  }
   0x1   :  { %11 = vsyncpa [#allocation4], 0  ;;  %s984_s18 = smov [#allocation2]   ;;  %s936_s22 = scalar_lea.hbm %s1082_s1, 6144 }
   0x2   :  { %s19_s19 = sshll.u32 %s984_s18, 4  ;;  %p937_p0 = scmp.ne.s32.totalorder %s1082_s1, %s936_s22  ;;  %s20_s19 = int_to_ptr.vmem [resolvable:$true] %s19_s19 }
   0x3   :  { %p940_p1 = scmp.lt.u32.totalorder %s936_s22, %s1082_s1 }
   0x5   :  { %p942_p2 = pnand %p940_p1, %p937_p0 }
   0x7   :  { %945 = shalt.err (!%p942_p2)
}
   0x8   :  { %s946_s27 = scalar_lea.vmem %s20_s19, 6144  ;;  %p951_p4 = scmp.lt.s32.totalorder %s20_s19, %s20_s19 }
   0x9   :  { %p947_p3 = scmp.ne.s32.totalorder %s20_s19, %s946_s27  ;;  %p952_p5 = scmp.lt.s32.totalorder %s946_s27, %s946_s27 }
   0xb   :  { %p953_p6 = por %p952_p5, %p951_p4 }
   0xd   :  { %p954_p7 = pnand %p953_p6, %p947_p3 }
   0xf   :  { %957 = shalt.err (!%p954_p7)
}
  0x10   :  { %s985_s28 = smov 64   ;;  %s986_s29 = smov 4  }
  0x11   :  { %25 = dma.hbm_to_vmem [thread:$0]  %s1082_s1, 6144, %s20_s19, [#allocation3], %s985_s28, %s985_s28, %s986_s29  }
  0x12   :  { %980 = dma.done.wait [#allocation3], 6144  }
  0x13   :  { %981 = vsyncadd [#allocation3], 4294961152  ;;  %v879_v0 = vld [vmem:[#allocation2 + $0x40] sm:$0xff]   ;;  %v883_v4 = vld [vmem:[#allocation2 + $0x48] sm:$0xff]   ;;  %v987_v21 = vmov 1983009808   ;;  %v44_v23 = vlaneseq }
  0x14   :  { %v880_v1 = vld [vmem:[#allocation2] sm:$0xff]   ;;  %777 = vmatprep.subr.bf16.mxu0 %v879_v0  ;;  %v884_v5 = vld [vmem:[#allocation2 + $0x8] sm:$0xff]   ;;  %v887_v8 = vld [vmem:[#allocation2 + $0x50] sm:$0xff]   ;;  %v42_v22 = vunpack.c.l.s4 %v987_v21  ;;  %vm989_vm0 = vmmov 0   ;;  %s990_s27 = smov [#allocation5]   ;;  %vm701_vm1 = vcmask 9216  }
  0x15   :  { %v881_v2 = vld [vmem:[#allocation2 + $0xc0] sm:$0xff]   ;;  %778 = vmatpush3.bf16.msra.mxu0 %v880_v1  ;;  %v885_v6 = vld [vmem:[#allocation2 + $0xc8] sm:$0xff]   ;;  %v888_v9 = vld [vmem:[#allocation2 + $0x10] sm:$0xff]   ;;  %v45_v29 = vshrl.u32 %v44_v23, 7  ;;  %s709_s28 = sshll.u32 %s990_s27, 4  ;;  %s710_s28 = int_to_ptr.vmem [resolvable:$true] %s709_s28 }
  0x16   :  { %v882_v3 = vld [vmem:[#allocation2 + $0x80] sm:$0xff]   ;;  %799 = vmatprep.subr.bf16.mxu1 %v881_v2  ;;  %779 = vmatprep.subr.bf16.mxu0 %v883_v4  ;;  %v886_v7 = vld [vmem:[#allocation2 + $0x88] sm:$0xff]   ;;  %v889_v10 = vld [vmem:[#allocation2 + $0xd0] sm:$0xff]   ;;  %v43_v28 = vunpack.c.0.s8 %v42_v22  ;;  %s958_s29 = scalar_lea.vmem %s710_s28, 32  ;;  %p963_p9 = scmp.lt.s32.totalorder %s710_s28, %s710_s28 }
  0x17   :  { %800 = vmatpush3.bf16.msra.mxu1 %v882_v3  ;;  %v890_v11 = vld [vmem:[#allocation2 + $0x90] sm:$0xff]   ;;  %v891_v12 = vld [vmem:[#allocation2 + $0x58] sm:$0xff]   ;;  %v895_v16 = vld [vmem:[#allocation2 + $0x60] sm:$0xff]   ;;  %p959_p8 = scmp.ne.s32.totalorder %s710_s28, %s958_s29  ;;  %p964_p10 = scmp.lt.s32.totalorder %s958_s29, %s958_s29 }
  0x18   :  { %801 = vmatprep.subr.bf16.mxu1 %v885_v6  ;;  %v892_v13 = vld [vmem:[#allocation2 + $0x18] sm:$0xff]   ;;  %v896_v17 = vld [vmem:[#allocation2 + $0x20] sm:$0xff]   ;;  %v899_v20 = vld [vmem:[#allocation2 + $0x68] sm:$0xff]   ;;  %v46_v34 = vsub.s32 %v43_v28, %v45_v29 }
  0x19   :  { %780 = vmatpush3.bf16.msra.mxu0 %v884_v5  ;;  %v893_v14 = vld [vmem:[#allocation2 + $0xd8] sm:$0xff]   ;;  %v897_v18 = vld [vmem:[#allocation2 + $0xe0] sm:$0xff]   ;;  %v900_v24 = vld [vmem:[#allocation2 + $0x28] sm:$0xff]   ;;  %v988_v5 = vmov 0.0   ;;  %p965_p11 = por %p964_p10, %p963_p9 }
  0x1a   :  { %781 = vmatprep.subr.bf16.mxu0 %v887_v8  ;;  %v894_v15 = vld [vmem:[#allocation2 + $0x98] sm:$0xff]   ;;  %v898_v19 = vld [vmem:[#allocation2 + $0xa0] sm:$0xff]   ;;  %v901_v25 = vld [vmem:[#allocation2 + $0xe8] sm:$0xff]  }
  0x1b   :  { %802 = vmatpush3.bf16.msra.mxu1 %v886_v7  ;;  %v902_v26 = vld [vmem:[#allocation2 + $0xa8] sm:$0xff]   ;;  %v903_v27 = vld [vmem:[#allocation2 + $0x70] sm:$0xff]   ;;  %v907_v33 = vld [vmem:[#allocation2 + $0x78] sm:$0xff]   ;;  %p966_p12 = pnand %p965_p11, %p959_p8 }
  0x1c   :  { %803 = vmatprep.subr.bf16.mxu1 %v889_v10  ;;  %v904_v30 = vld [vmem:[#allocation2 + $0x30] sm:$0xff]   ;;  %v908_v35 = vld [vmem:[#allocation2 + $0x38] sm:$0xff]   ;;  %v36_v37 = vld [vmem:[%s1081_s0] sm:$0xff] }
  0x1d   :  { %782 = vmatpush3.bf16.msra.mxu0 %v888_v9  ;;  %v905_v31 = vld [vmem:[#allocation2 + $0xf0] sm:$0xff]   ;;  %v909_v36 = vld [vmem:[#allocation2 + $0xf8] sm:$0xff]   ;;  %v47_v38 = vrot.slane %v36_v37, %v46_v34  ;;  %v40_v40 = vcombine.high %v36_v37, %v36_v37  ;;  %v911_v41 = vld [vmem:[#allocation2 + $0x140] sm:$0xff]  }
  0x1e   :  { %783 = vmatprep.subr.bf16.mxu0 %v891_v12  ;;  %v906_v32 = vld [vmem:[#allocation2 + $0xb0] sm:$0xff]   ;;  %v910_v39 = vld [vmem:[#allocation2 + $0xb8] sm:$0xff]   ;;  %v913_v47 = vld [vmem:[#allocation2 + $0x100] sm:$0xff]  }
  0x1f   :  { %804 = vmatpush3.bf16.msra.mxu1 %v890_v11  ;;  %v55_v42 = vcombine.high %v47_v38, %v47_v38  ;;  %v54_v43 = vrot.slane %v40_v40, %v46_v34  ;;  %v71_v44 = vpack.c.bf16 %v47_v38, %v47_v38  ;;  %v914_v49 = vld [vmem:[#allocation2 + $0x148] sm:$0xff]   ;;  %v916_v52 = vld [vmem:[#allocation2 + $0x150] sm:$0xff]   ;;  %v918_v54 = vld [vmem:[#allocation2 + $0x158] sm:$0xff]  }
  0x20   :  { %805 = vmatprep.subr.bf16.mxu1 %v893_v14  ;;  %v915_v51 = vld [vmem:[#allocation2 + $0x108] sm:$0xff]   ;;  %v917_v53 = vld [vmem:[#allocation2 + $0x110] sm:$0xff]   ;;  %v919_v55 = vld [vmem:[#allocation2 + $0x118] sm:$0xff]  }
  0x21   :  { %784 = vmatpush3.bf16.msra.mxu0 %v892_v13  ;;  %v72_v45 = vpack.c.bf16 %v55_v42, %v55_v42  ;;  %v56_v46 = vcombine.high %v54_v43, %v54_v43  ;;  %v73_v48 = vpack.c.bf16 %v54_v43, %v54_v43  ;;  %v920_v56 = vld [vmem:[#allocation2 + $0x160] sm:$0xff]   ;;  %v718_v57 = vld.sshfl [vmem:[%s1081_s0 + $0x8] sm:$0x33 pattern:$0x76325410]  ;;  %v924_v63 = vld [vmem:[#allocation2 + $0x170] sm:$0xff]  }
  0x22   :  { %785 = vmatprep.subr.bf16.mxu0 %v895_v16  ;;  %v64_v58 = vcombine.high %v718_v57, %v718_v57  ;;  %v921_v59 = vld [vmem:[#allocation2 + $0x120] sm:$0xff]   ;;  %v922_v60 = vld [vmem:[#allocation2 + $0x168] sm:$0xff]   ;;  %v925_v0 = vld [vmem:[#allocation2 + $0x130] sm:$0xff]   ;;  %v75_v3 = vpack.c.bf16 %v718_v57, %v718_v57 }
  0x23   :  { %806 = vmatpush3.bf16.msra.mxu1 %v894_v15  ;;  %500 = vmatprep.mubr.bf16.mxu0 %v72_v45  ;;  %v74_v50 = vpack.c.bf16 %v56_v46, %v56_v46  ;;  %v923_v62 = vld [vmem:[#allocation2 + $0x128] sm:$0xff]   ;;  %v926_v1 = vld [vmem:[#allocation2 + $0x178] sm:$0xff]   ;;  %v928_v4 = vld [vmem:[%s1084_s3] sm:$0xff]  }
  0x24   :  { %807 = vmatprep.subr.bf16.mxu1 %v897_v18  ;;  %v76_v61 = vpack.c.bf16 %v64_v58, %v64_v58  ;;  %v927_v2 = vld [vmem:[#allocation2 + $0x138] sm:$0xff]   ;;  %v929_v6 = vld [vmem:[%s1084_s3 + $0x8] sm:$0xff]   ;;  %v930_v7 = vld [vmem:[%s1084_s3 + $0x10] sm:$0xff]  }
  0x25   :  { %786 = vmatpush3.bf16.msra.mxu0 %v896_v17  ;;  %540 = vmatprep.mubr.bf16.mxu1 %v74_v50  ;;  %v931_v8 = vld [vmem:[%s1084_s3 + $0x18] sm:$0xff]   ;;  %v932_v9 = vld [vmem:[%s1084_s3 + $0x20] sm:$0xff]   ;;  %v933_v10 = vld [vmem:[%s1084_s3 + $0x28] sm:$0xff]  }
  0x26   :  { %787 = vmatprep.subr.bf16.mxu0 %v899_v20  ;;  %v934_v11 = vld [vmem:[%s1084_s3 + $0x30] sm:$0xff]   ;;  %v935_v12 = vld [vmem:[%s1084_s3 + $0x38] sm:$0xff]   ;;  %v719_v14 = vld [vmem:[%s1083_s2] ss:$0 sm:$0xff] }
  0x27   :  { %808 = vmatpush3.bf16.msra.mxu1 %v898_v19  ;;  %v768_v34 = vld [vmem:[%s1085_s4] ss:$0 sm:$0xff] }
  0x28   :  { %809 = vmatprep.subr.bf16.mxu1 %v901_v25 }
  0x29   :  { %788 = vmatpush3.bf16.msra.mxu0 %v900_v24 }
  0x2a   :  { %789 = vmatprep.subr.bf16.mxu0 %v903_v27 }
  0x2b   :  { %810 = vmatpush3.bf16.msra.mxu1 %v902_v26 }
  0x2c   :  { %811 = vmatprep.subr.bf16.mxu1 %v905_v31 }
  0x2d   :  { %790 = vmatpush3.bf16.msra.mxu0 %v904_v30 }
  0x2e   :  { %791 = vmatprep.subr.bf16.mxu0 %v907_v33 }
  0x2f   :  { %812 = vmatpush3.bf16.msra.mxu1 %v906_v32 }
  0x30   :  { %813 = vmatprep.subr.bf16.mxu1 %v909_v36 }
  0x31   :  { %792 = vmatpush3.bf16.msra.mxu0 %v908_v35 }
  0x32   :  { %821 = vmatprep.subr.bf16.mxu0 %v911_v41 }
  0x33   :  { %814 = vmatpush3.bf16.msra.mxu1 %v910_v39 }
  0x34   :  { %501 = vmatmul.mubr.bf16.vlgmr.msra.gmra.mrb[0].mxu0 %v71_v44  ;;  %852 = vmatprep.subr.bf16.mxu1 %v988_v5 }
  0x35   :  { %822 = vmatpush3.bf16.msra.mxu0 %v913_v47  ;;  %580 = vmatprep.mubr.bf16.mxu0 %v76_v61 }
  0x36   :  { %541 = vmatmul.mubr.bf16.vlgmr.msra.gmra.mrb[0].mxu1 %v73_v48  ;;  %823 = vmatprep.subr.bf16.mxu0 %v914_v49 }
  0x37   :  { %853 = vmatpush3.bf16.msra.mxu1 %v928_v4  ;;  %868 = vmatprep.mubr.msk.bf16.mxu1 %vm989_vm0, %v988_v5 }
  0x38   :  { %854 = vmatprep.subr.bf16.mxu1 %v988_v5 }
  0x39   :  { %824 = vmatpush3.bf16.msra.mxu0 %v915_v51 }
  0x3a   :  { %825 = vmatprep.subr.bf16.mxu0 %v916_v52 }
  0x3b   :  { %855 = vmatpush3.bf16.msra.mxu1 %v929_v6 }
  0x3c   :  { %856 = vmatprep.subr.bf16.mxu1 %v988_v5 }
  0x3d   :  { %826 = vmatpush3.bf16.msra.mxu0 %v917_v53 }
  0x3e   :  { %827 = vmatprep.subr.bf16.mxu0 %v918_v54 }
  0x3f   :  { %857 = vmatpush3.bf16.msra.mxu1 %v930_v7 }
  0x40   :  { %858 = vmatprep.subr.bf16.mxu1 %v988_v5 }
  0x41   :  { %828 = vmatpush3.bf16.msra.mxu0 %v919_v55 }
  0x42   :  { %829 = vmatprep.subr.bf16.mxu0 %v920_v56 }
  0x43   :  { %859 = vmatpush3.bf16.msra.mxu1 %v931_v8 }
  0x44   :  { %860 = vmatprep.subr.bf16.mxu1 %v988_v5 }
  0x45   :  { %830 = vmatpush3.bf16.msra.mxu0 %v921_v59 }
  0x46   :  { %831 = vmatprep.subr.bf16.mxu0 %v922_v60 }
  0x47   :  { %861 = vmatpush3.bf16.msra.mxu1 %v932_v9 }
  0x48   :  { %862 = vmatprep.subr.bf16.mxu1 %v988_v5 }
  0x49   :  { %832 = vmatpush3.bf16.msra.mxu0 %v923_v62 }
  0x4a   :  { %833 = vmatprep.subr.bf16.mxu0 %v924_v63 }
  0x4b   :  { %863 = vmatpush3.bf16.msra.mxu1 %v933_v10 }
  0x4c   :  { %864 = vmatprep.subr.bf16.mxu1 %v988_v5 }
  0x4d   :  { %834 = vmatpush3.bf16.msra.mxu0 %v925_v0 }
  0x4e   :  { %835 = vmatprep.subr.bf16.mxu0 %v926_v1 }
  0x4f   :  { %865 = vmatpush3.bf16.msra.mxu1 %v934_v11 }
  0x50   :  { %866 = vmatprep.subr.bf16.mxu1 %v988_v5 }
  0x51   :  { %836 = vmatpush3.bf16.msra.mxu0 %v927_v2 }
  0x53   :  { %867 = vmatpush3.bf16.msra.mxu1 %v935_v12 }
  0x54   :  { %581 = vmatmul.mubr.bf16.vlgmr.msra.gmra.mrb[4].mxu0 %v75_v3 }
 0x107   :  { %v793_v13 = vpop.f32.mrb[0].mxu0 }
 0x108   :  { %v794_v15 = vpop.f32.mrb[1].mxu0 }
 0x109   :  { %v795_v16 = vadd.f32 %v794_v15, %v793_v13  ;;  %v796_v17 = vpop.f32.mrb[2].mxu0  ;;  %v815_v18 = vpop.f32.mrb[0].mxu1 }
 0x10a   :  { %v797_v19 = vpop.f32.mrb[3].mxu0  ;;  %v816_v20 = vpop.f32.mrb[1].mxu1 }
 0x10b   :  { %v503_v21 = vadd.f32 %v795_v16, %v719_v14  ;;  %v817_v22 = vadd.f32 %v816_v20, %v815_v18  ;;  %v818_v23 = vpop.f32.mrb[2].mxu1 }
 0x10c   :  { %v819_v24 = vpop.f32.mrb[3].mxu1 }
 0x10d   :  { %v543_v25 = vadd.f32 %v817_v22, %v503_v21 }
 0x127   :  { %v837_v26 = vpop.f32.mrb[4].mxu0 }
 0x128   :  { %v838_v27 = vpop.f32.mrb[5].mxu0 }
 0x129   :  { %v839_v28 = vadd.f32 %v838_v27, %v837_v26  ;;  %v840_v29 = vpop.f32.mrb[6].mxu0 }
 0x12a   :  { %v841_v30 = vpop.f32.mrb[7].mxu0 }
 0x12b   :  { %v583_v31 = vadd.f32 %v839_v28, %v543_v25 }
 0x12d   :  { %v588_v32 = vmax.f32 %v583_v31, 0.0 }
 0x12f   :  { %v589_v33 = vpack.c.bf16 %v588_v32, %v588_v32 }
 0x131   :  { %869 = vmatmul.mubr.bf16.vlgmr.msra.gmra.mrb[4].mxu1 %v589_v33 }
 0x204   :  { %v695_v35 = vpop.f32.mrb[4].mxu1 }
 0x205   :  { %v696_v36 = vadd.f32 %v768_v34, %v695_v35  ;;  %v870_v37 = vpop.f32.mrb[5].mxu1 }
 0x206   :  { %v698_v38 = vpop.f32.mrb[6].mxu1 }
 0x207   :  { %v871_v39 = vpop.f32.mrb[7].mxu1  ;;  %702 = vst.msk [vmem:[#allocation5] sm:$0x3] %vm701_vm1, %v696_v36 }
 0x208   :  { %969 = shalt.err (!%p966_p12)
}
 0x209   :  { %s970_s4 = scalar_lea.hbm %s1086_s5, 32 }
 0x20a   :  { %p971_p13 = scmp.ne.s32.totalorder %s1086_s5, %s970_s4  ;;  %p974_p0 = scmp.lt.u32.totalorder %s970_s4, %s1086_s5 }
 0x20c   :  { %p976_p1 = pnand %p974_p0, %p971_p13 }
 0x20e   :  { %979 = shalt.err (!%p976_p1)
}
 0x20f   :  { %712 = dma.vmem_to_hbm [thread:$0]  %s710_s28, 32, %s1086_s5, [#allocation4]  }
 0x210   :  { %982 = dma.done.wait [#allocation4], 32  }
 0x211   :  { %983 = vsyncadd [#allocation4], 4294967264 }
 0x212   :  { %716 = vsyncpa [#allocation3], 1 }
 0x213   :  { %717 = vsyncpa [#allocation4], 1 }

</bundles_post_ra>
